<compile_context>
chip_gen: v5e
topology: v5e:2x2
jax: 0.10.0
libtpu: 0.0.40
codegen_flags: <defaults>
</compile_context>

<pallas_src>
import jax
import jax.numpy as jnp
from jax.experimental import pallas as pl
from jax.experimental.pallas import tpu as pltpu


_PACK = 8                       # original rows packed into one lane-dense row
_TMP_TARGET = 1024              # target packed rows per grid step (= 8192 original rows)
_TILE_VMEM_BUDGET = 24 << 20    # budget for the double-buffered streamed tiles


def _round_up(x, m):
    return (x + m - 1) // m * m


def _lane_pad(n):
    return _round_up(n, 128)


def _sub_pad(n):
    return _round_up(n, 8)


def _modulator_kernel(x_ref, wg_ref, bg_ref, wb_ref, bb_ref, gamma_ref, beta_ref):
    """One M-tile: gamma = softplus(x @ Wg + bg), beta = x @ Wb + bb (row-packed layout)."""
    x = x_ref[...]                                                       # (TMp, 8*Cin)

    # gamma head: linear + numerically stable softplus (only this head pays exp/log1p).
    zg = jnp.dot(x, wg_ref[...], preferred_element_type=jnp.float32) + bg_ref[...]
    sp = jnp.maximum(zg, 0.0) + jnp.log1p(jnp.exp(-jnp.abs(zg)))
    gamma_ref[...] = sp.astype(gamma_ref.dtype)

    # beta head: plain linear.
    zb = jnp.dot(x, wb_ref[...], preferred_element_type=jnp.float32) + bb_ref[...]
    beta_ref[...] = zb.astype(beta_ref.dtype)


def _block_diag(w, pack):
    """(Cin, Cout) -> (pack*Cin, pack*Cout) block-diagonal weight for row-packed x."""
    cin, cout = w.shape
    eye = jnp.eye(pack, dtype=w.dtype)
    wbd = jnp.einsum("pq,co->pcqo", eye, w)          # [p, c, q, o] = eye[p,q] * w[c,o]
    return wbd.reshape(pack * cin, pack * cout)


def pack_modulator_params(w_g, b_g, w_b, b_b):
    """Build the row-packed block-diagonal params ONCE (hoisted out of the call path).

    w_*: (Cin, Cout) (i.e. PyTorch weight transposed), b_*: (Cout,).
    """
    pack = _PACK
    cout = w_g.shape[1]
    wg_bd = _block_diag(w_g, pack)                                   # (pack*Cin, pack*Cout)
    wb_bd = _block_diag(w_b, pack)
    bg_bd = jnp.tile(b_g.reshape(1, cout), (1, pack))                # (1, pack*Cout)
    bb_bd = jnp.tile(b_b.reshape(1, cout), (1, pack))
    return wg_bd, bg_bd, wb_bd, bb_bd


def feature_modulator(x, packed_params):
    """x: [..., Cin]; packed_params from pack_modulator_params().

    Returns (gamma, beta), each [..., Cout]:
      gamma = softplus(x @ w_g + b_g);  beta = x @ w_b + b_b
    """
    wg_bd, bg_bd, wb_bd, bb_bd = packed_params
    pack = _PACK
    kin = wg_bd.shape[0]          # pack * Cin
    kout = wg_bd.shape[1]         # pack * Cout
    cin = kin // pack
    cout = kout // pack

    orig_shape = x.shape
    assert orig_shape[-1] == cin, "last axis of x must equal in_channels"

    x2d = x.reshape(-1, cin)
    m = x2d.shape[0]
    itemsize = x2d.dtype.itemsize

    # --- choose packed-row tiling -------------------------------------------------
    mp = pl.cdiv(max(m, 1), pack)                       # packed rows needed
    # VMEM-safe max packed rows per tile (lane-padded, double-buffered x + 2 outputs).
    bytes_per_row = (_lane_pad(kin) + 2 * _lane_pad(kout)) * itemsize
    tmp_vmem_max = max(8, (_TILE_VMEM_BUDGET // (2 * bytes_per_row)) // 8 * 8)

    n_steps = max(1, pl.cdiv(mp, _TMP_TARGET))
    if n_steps == 1 and mp <= tmp_vmem_max:
        tm_p = mp                                       # single full block (no padding)
    else:
        n_steps = max(n_steps, pl.cdiv(mp, tmp_vmem_max))
        tm_p = _round_up(pl.cdiv(mp, n_steps), 8)       # sublane multiple; padding <= a few rows
        n_steps = pl.cdiv(mp, tm_p)
    mp_pad = n_steps * tm_p
    m_pad = mp_pad * pack

    # Pad only when M is ragged / doesn't split evenly (copies input; no-op otherwise).
    if m_pad != m:
        x2d = jnp.pad(x2d, ((0, m_pad - m), (0, 0)))
    xp = x2d.reshape(mp_pad, kin)                       # bitwise (free) row-packing

    # --- VMEM limit from lane-padded sizes (v7x has only 64 MiB) -------------------
    tile_bytes = 2 * tm_p * bytes_per_row
    weight_bytes = 2 * 2 * (_sub_pad(kin) + 8) * _lane_pad(kout) * 4   # 2 heads x 2 buffers
    vmem_limit = int(min(max(tile_bytes + weight_bytes + (4 << 20), 16 << 20), 40 << 20))

    gamma_p, beta_p = pl.pallas_call(
        _modulator_kernel,
        out_shape=(jax.ShapeDtypeStruct((mp_pad, kout), x.dtype),
                   jax.ShapeDtypeStruct((mp_pad, kout), x.dtype)),
        grid=(n_steps,),
        in_specs=[
            pl.BlockSpec((tm_p, kin), lambda i: (i, 0)),     # streamed lane-dense x tiles
            pl.BlockSpec((kin, kout), lambda i: (0, 0)),     # resident gamma weight
            pl.BlockSpec((1, kout), lambda i: (0, 0)),       # resident gamma bias
            pl.BlockSpec((kin, kout), lambda i: (0, 0)),     # resident beta weight
            pl.BlockSpec((1, kout), lambda i: (0, 0)),       # resident beta bias
        ],
        out_specs=[
            pl.BlockSpec((tm_p, kout), lambda i: (i, 0)),    # gamma (lane-dense)
            pl.BlockSpec((tm_p, kout), lambda i: (i, 0)),    # beta  (lane-dense)
        ],
        compiler_params=pltpu.CompilerParams(
            dimension_semantics=("parallel",),
            vmem_limit_bytes=vmem_limit,
        ),
    )(xp, wg_bd, bg_bd, wb_bd, bb_bd)

    # Bitwise un-packing back to (M_pad, Cout); slice only if we padded.
    gamma = gamma_p.reshape(m_pad, cout)
    beta = beta_p.reshape(m_pad, cout)
    if m_pad != m:
        gamma = gamma[:m]
        beta = beta[:m]
    out_shape = orig_shape[:-1] + (cout,)
    return gamma.reshape(out_shape), beta.reshape(out_shape)


def _reference(x, w_g, b_g, w_b, b_b):
    zg = x @ w_g + b_g
    gamma = jnp.maximum(zg, 0.0) + jnp.log1p(jnp.exp(-jnp.abs(zg)))
    beta = x @ w_b + b_b
    return gamma, beta


if __name__ == "__main__":
    key = jax.random.PRNGKey(0)

    def make_params(k, cin, cout):
        kwg, kbg, kwb, kbb = jax.random.split(k, 4)
        bound = 1.0 / (cin ** 0.5)
        w_g = jax.random.uniform(kwg, (cin, cout), minval=-bound, maxval=bound, dtype=jnp.float32)
        b_g = jax.random.uniform(kbg, (cout,), minval=-bound, maxval=bound, dtype=jnp.float32)
        w_b = jax.random.uniform(kwb, (cin, cout), minval=-bound, maxval=bound, dtype=jnp.float32)
        b_b = jax.random.uniform(kbb, (cout,), minval=-bound, maxval=bound, dtype=jnp.float32)
        return w_g, b_g, w_b, b_b

    def check(x, params, atol=1e-5, rtol=1e-5):
        packed = pack_modulator_params(*params)      # built once per parameter set
        gamma, beta = feature_modulator(x, packed)
        jax.block_until_ready((gamma, beta))
        gamma_ref, beta_ref = _reference(x, *params)
        assert gamma.shape == gamma_ref.shape and beta.shape == beta_ref.shape
        assert jnp.allclose(gamma, gamma_ref, atol=atol, rtol=rtol)
        assert jnp.allclose(beta, beta_ref, atol=atol, rtol=rtol)

    k1, k2, k3, kp1, kp2 = jax.random.split(key, 5)

    # 1) Module-consistent config: FilteringNetwork modulators are FeatureModulator(1, C);
    #    fm_in is a per-sample scalar feature of shape (B, 1).
    params_a = make_params(kp1, 1, 32)
    fm_in = jax.random.normal(k1, (2, 1), dtype=jnp.float32)
    check(fm_in, params_a)

    # 2) Wider-channel config, 3-D input (per-token modulation path); M multiple of 8 ->
    #    zero wrapper pad/slice copies.
    params_b = make_params(kp2, 16, 32)
    x_mid = jax.random.normal(k2, (2, 8, 16), dtype=jnp.float32)
    check(x_mid, params_b)

    # 3) Large ragged M -> multi-step grid (grid=(3,)) exercising the padded tail path.
    x_big = jax.random.normal(k3, (16391, 16), dtype=jnp.float32)
    check(x_big, params_b)

    print("KERNEL_OK")
</pallas_src>

<mosaic_0001>
module attributes {stable_mosaic.version = 11 : i64} {
  func.func @_modulator_kernel(%arg0: i32, %arg1: memref<1x8xf32, #tpu.memory_space<vmem>>, %arg2: memref<8x256xf32, #tpu.memory_space<vmem>>, %arg3: memref<1x256xf32, #tpu.memory_space<vmem>>, %arg4: memref<8x256xf32, #tpu.memory_space<vmem>>, %arg5: memref<1x256xf32, #tpu.memory_space<vmem>>, %arg6: memref<1x256xf32, #tpu.memory_space<vmem>>, %arg7: memref<1x256xf32, #tpu.memory_space<vmem>>) attributes {dimension_semantics = [#tpu.dimension_semantics<parallel>], iteration_bounds = array<i64: 1>, scalar_prefetch = 0 : i64, scratch_operands = 0 : i64, tpu.core_type = #tpu.core_type<tc>, window_params = [{transform_indices = @transform_0, window_bounds = array<i64: 1, 8>}, {pipeline_mode = #tpu.pipeline_mode<synchronous>, transform_indices = @transform_1, window_bounds = array<i64: 8, 256>}, {pipeline_mode = #tpu.pipeline_mode<synchronous>, transform_indices = @transform_2, window_bounds = array<i64: 1, 256>}, {pipeline_mode = #tpu.pipeline_mode<synchronous>, transform_indices = @transform_3, window_bounds = array<i64: 8, 256>}, {pipeline_mode = #tpu.pipeline_mode<synchronous>, transform_indices = @transform_4, window_bounds = array<i64: 1, 256>}, {transform_indices = @transform_5, window_bounds = array<i64: 1, 256>}, {transform_indices = @transform_6, window_bounds = array<i64: 1, 256>}]} {
    %c0 = arith.constant 0 : index
    %c0_0 = arith.constant 0 : index
    %0 = vector.load %arg1[%c0, %c0_0] : memref<1x8xf32, #tpu.memory_space<vmem>>, vector<1x8xf32>
    %c0_1 = arith.constant 0 : index
    %c0_2 = arith.constant 0 : index
    %1 = vector.load %arg2[%c0_1, %c0_2] : memref<8x256xf32, #tpu.memory_space<vmem>>, vector<8x256xf32>
    %cst = arith.constant dense<0.000000e+00> : vector<1x256xf32>
    %2 = tpu.matmul %0, %1, %cst {dimension_numbers = #tpu.dot_dimension_numbers<[1], [0], [0], [1], [0, 0, 1, 1], [], []>} : vector<1x8xf32>, vector<8x256xf32>, vector<1x256xf32> -> vector<1x256xf32>
    %c0_3 = arith.constant 0 : index
    %c0_4 = arith.constant 0 : index
    %3 = vector.load %arg3[%c0_3, %c0_4] : memref<1x256xf32, #tpu.memory_space<vmem>>, vector<1x256xf32>
    %4 = arith.addf %2, %3 : vector<1x256xf32>
    %cst_5 = arith.constant 0.000000e+00 : f32
    %5 = vector.broadcast %cst_5 : f32 to vector<1x256xf32>
    %6 = arith.maximumf %4, %5 : vector<1x256xf32>
    %7 = math.absf %4 : vector<1x256xf32>
    %cst_6 = arith.constant 0.000000e+00 : f32
    %8 = vector.broadcast %cst_6 : f32 to vector<1x256xf32>
    %9 = arith.subf %8, %7 : vector<1x256xf32>
    %10 = math.exp %9 : vector<1x256xf32>
    %11 = math.log1p %10 : vector<1x256xf32>
    %12 = arith.addf %6, %11 : vector<1x256xf32>
    %c0_7 = arith.constant 0 : index
    %c0_8 = arith.constant 0 : index
    %13 = vector.load %arg6[%c0_7, %c0_8] : memref<1x256xf32, #tpu.memory_space<vmem>>, vector<1x256xf32>
    tpu.vector_store %arg6[%c0_7, %c0_8], %12 {strides = array<i32>} : memref<1x256xf32, #tpu.memory_space<vmem>>, vector<1x256xf32>,
    %c0_9 = arith.constant 0 : index
    %c0_10 = arith.constant 0 : index
    %14 = vector.load %arg4[%c0_9, %c0_10] : memref<8x256xf32, #tpu.memory_space<vmem>>, vector<8x256xf32>
    %cst_11 = arith.constant dense<0.000000e+00> : vector<1x256xf32>
    %15 = tpu.matmul %0, %14, %cst_11 {dimension_numbers = #tpu.dot_dimension_numbers<[1], [0], [0], [1], [0, 0, 1, 1], [], []>} : vector<1x8xf32>, vector<8x256xf32>, vector<1x256xf32> -> vector<1x256xf32>
    %c0_12 = arith.constant 0 : index
    %c0_13 = arith.constant 0 : index
    %16 = vector.load %arg5[%c0_12, %c0_13] : memref<1x256xf32, #tpu.memory_space<vmem>>, vector<1x256xf32>
    %17 = arith.addf %15, %16 : vector<1x256xf32>
    %c0_14 = arith.constant 0 : index
    %c0_15 = arith.constant 0 : index
    %18 = vector.load %arg7[%c0_14, %c0_15] : memref<1x256xf32, #tpu.memory_space<vmem>>, vector<1x256xf32>
    tpu.vector_store %arg7[%c0_14, %c0_15], %17 {strides = array<i32>} : memref<1x256xf32, #tpu.memory_space<vmem>>, vector<1x256xf32>,
    return
  }
  func.func @transform_0(%arg0: i32) -> (i32, i32) {
    %c0_i32 = arith.constant 0 : i32
    %c0_i32_0 = arith.constant 0 : i32
    return %arg0, %c0_i32 : i32, i32
  }
  func.func @transform_1(%arg0: i32) -> (i32, i32) {
    %c0_i32 = arith.constant 0 : i32
    %c0_i32_0 = arith.constant 0 : i32
    %c0_i32_1 = arith.constant 0 : i32
    return %c0_i32, %c0_i32_0 : i32, i32
  }
  func.func @transform_2(%arg0: i32) -> (i32, i32) {
    %c0_i32 = arith.constant 0 : i32
    %c0_i32_0 = arith.constant 0 : i32
    %c0_i32_1 = arith.constant 0 : i32
    return %c0_i32, %c0_i32_0 : i32, i32
  }
  func.func @transform_3(%arg0: i32) -> (i32, i32) {
    %c0_i32 = arith.constant 0 : i32
    %c0_i32_0 = arith.constant 0 : i32
    %c0_i32_1 = arith.constant 0 : i32
    return %c0_i32, %c0_i32_0 : i32, i32
  }
  func.func @transform_4(%arg0: i32) -> (i32, i32) {
    %c0_i32 = arith.constant 0 : i32
    %c0_i32_0 = arith.constant 0 : i32
    %c0_i32_1 = arith.constant 0 : i32
    return %c0_i32, %c0_i32_0 : i32, i32
  }
  func.func @transform_5(%arg0: i32) -> (i32, i32) {
    %c0_i32 = arith.constant 0 : i32
    %c0_i32_0 = arith.constant 0 : i32
    return %arg0, %c0_i32 : i32, i32
  }
  func.func @transform_6(%arg0: i32) -> (i32, i32) {
    %c0_i32 = arith.constant 0 : i32
    %c0_i32_0 = arith.constant 0 : i32
    return %arg0, %c0_i32 : i32, i32
  }
}

</mosaic_0001>

<bundles_post_ra>
// kernel: tpu_custom_call.1
= control target key start
LH: loop header
LB: loop body
LE: loop exit
PB: predicated region body
PF: predicated region fallthrough
CT: control target
= control target key end

     0   :  { %12 = vsyncpa [#allocation3], 0  ;;  %s506_s0 = inlined_call_operand.hbm [shape: f32[1,8], index: 0, kind: input, shape index: {}]   ;;  %s507_s1 = inlined_call_operand.hbm [shape: f32[8,256], index: 1, kind: input, shape index: {}]   ;;  %s508_s2 = inlined_call_operand.hbm [shape: f32[1,256], index: 2, kind: input, shape index: {}]   ;;  %s509_s3 = inlined_call_operand.hbm [shape: f32[8,256], index: 3, kind: input, shape index: {}]   ;;  %s510_s4 = inlined_call_operand.vmem [shape: f32[1,256], index: 4, kind: input, shape index: {}]   ;;  %s511_s5 = inlined_call_operand.hbm [shape: f32[1,256], index: 5, kind: output, shape index: {0}]   ;;  %s512_s6 = inlined_call_operand.hbm [shape: f32[1,256], index: 6, kind: output, shape index: {1}]  }
   0x1   :  { %13 = vsyncpa [#allocation6], 0 }
   0x2   :  { %14 = vsyncpa [#allocation9], 0 }
   0x3   :  { %15 = vsyncpa [#allocation4], 0  ;;  %s33_s23 = sshll.u32 %s507_s1, 4  ;;  %s34_s23 = int_to_ptr.hbm [resolvable:$true] %s33_s23 }
   0x4   :  { %16 = vsyncpa [#allocation12], 0  ;;  %s434_s24 = smov [#allocation5]   ;;  %s22_s28 = sshll.u32 %s506_s0, 4  ;;  %s23_s28 = int_to_ptr.hbm [resolvable:$true] %s22_s28 }
   0x5   :  { %s35_s25 = sshll.u32 %s434_s24, 4  ;;  %s435_s29 = smov [#allocation2]   ;;  %s36_s25 = int_to_ptr.vmem [resolvable:$true] %s35_s25 }
   0x6   :  { %38 = dma.hbm_to_vmem [thread:$0]  %s34_s23, 256, %s36_s25, [#allocation6]  }
   0x7   :  { %s24_s30 = sshll.u32 %s435_s29, 4  ;;  %s44_s9 = sshll.u32 %s508_s2, 4  ;;  %s25_s30 = int_to_ptr.vmem [resolvable:$true] %s24_s30  ;;  %s45_s9 = int_to_ptr.hbm [resolvable:$true] %s44_s9 }
   0x8   :  { %27 = dma.hbm_to_vmem [thread:$0]  %s23_s28, 16, %s25_s30, [#allocation3]  }
   0x9   :  { %s55_s11 = sshll.u32 %s509_s3, 4  ;;  %s436_s12 = smov [#allocation7]   ;;  %s56_s11 = int_to_ptr.hbm [resolvable:$true] %s55_s11 }
   0xa   :  { %s46_s13 = sshll.u32 %s436_s12, 4  ;;  %s437_s0 = smov [#allocation8]   ;;  %s47_s13 = int_to_ptr.vmem [resolvable:$true] %s46_s13 }
   0xb   :  { %49 = dma.hbm_to_vmem [thread:$0]  %s45_s9, 32, %s47_s13, [#allocation6]  }
   0xc   :  { %s57_s14 = sshll.u32 %s437_s0, 4  ;;  %s58_s14 = int_to_ptr.vmem [resolvable:$true] %s57_s14 }
   0xd   :  { %60 = dma.hbm_to_vmem [thread:$0]  %s56_s11, 256, %s58_s14, [#allocation9]  }
   0xe   :  { %424 = dma.done.wait [#allocation3], 16  }
   0xf   :  { %425 = vsyncadd [#allocation3], 4294967280 }
  0x10   :  { %426 = dma.done.wait [#allocation6], 288  }
  0x11   :  { %427 = vsyncadd [#allocation6], 4294967008 }
  0x12   :  { %428 = dma.done.wait [#allocation9], 256  }
  0x13   :  { %429 = vsyncadd [#allocation9], 4294967040  ;;  %vm88_vm0 = vcmask 64512   ;;  %v80_v0 = vld [vmem:[#allocation5] sm:$0xff]  ;;  %v81_v1 = vld [vmem:[#allocation5 + $0x8] sm:$0xff]  ;;  %v168_v21 = vlaneseq  ;;  %s438_s15 = smov [#allocation11]  }
  0x14   :  { %v79_v2 = vld [vmem:[#allocation2] sm:$0x1]  ;;  %107 = vmatpush.msra.mxu0 %v80_v0  ;;  %127 = vmatpush.msra.mxu1 %v81_v1  ;;  %v173_v4 = vld [vmem:[#allocation8] sm:$0xff]  ;;  %v82_v5 = vld [vmem:[#allocation7] sm:$0x3]  ;;  %s243_s16 = sshll.u32 %s438_s15, 4  ;;  %s244_s16 = int_to_ptr.vmem [resolvable:$true] %s243_s16 }
  0x15   :  { %v174_v3 = vld [vmem:[#allocation8 + $0x8] sm:$0xff]  ;;  %262 = vmatmul.msk.f32.vlgmr.msra.gmra.mxu0 %vm88_vm0, %v79_v2  ;;  %263 = vmatmul.msk.f32.vlgmr.msra.gmra.mxu1 %vm88_vm0, %v79_v2  ;;  %v84_v6 = vperm.slane %v82_v5, 0  ;;  %v85_v7 = vperm.slane %v82_v5, 1  ;;  %v175_v12 = vld [vmem:[%s510_s4] sm:$0x3]  ;;  %s245_s4 = sshll.u32 %s512_s6, 4  ;;  %s246_s4 = int_to_ptr.hbm [resolvable:$true] %s245_s4 }
  0x16   :  { %216 = vmatpush.msra.mxu3 %v174_v3  ;;  %196 = vmatpush.msra.mxu2 %v173_v4  ;;  %v178_v17 = vperm.slane %v175_v12, 1  ;;  %v177_v18 = vperm.slane %v175_v12, 0  ;;  %vm165_vm1 = vcmask 1040384   ;;  %vm493_vm2 = vcmp.lt.s32.totalorder %v168_v21, 256  ;;  %s439_s6 = smov [#allocation10]   ;;  %s234_s22 = sshll.u32 %s511_s5, 4  ;;  %s235_s22 = int_to_ptr.hbm [resolvable:$true] %s234_s22 }
  0x17   :  { %265 = vmatmul.msk.f32.vlgmr.msra.gmra.mxu3 %vm88_vm0, %v79_v2  ;;  %264 = vmatmul.msk.f32.vlgmr.msra.gmra.mxu2 %vm88_vm0, %v79_v2  ;;  %s232_s19 = sshll.u32 %s439_s6, 4  ;;  %s233_s19 = int_to_ptr.vmem [resolvable:$true] %s232_s19 }
  0x92   :  { %v109_v8 = vpop.f32.mrf.mxu0  ;;  %v129_v9 = vpop.f32.mrf.mxu1 }
  0x93   :  { %v110_v10 = vadd.f32 %v109_v8, %v84_v6  ;;  %v130_v11 = vadd.f32 %v129_v9, %v85_v7 }
  0x95   :  { %v134_v13 = vand.u32 2147483647, %v110_v10  ;;  %v135_v14 = vand.u32 2147483647, %v130_v11  ;;  %v133_v45 = vmax.f32 %v130_v11, 0.0  ;;  %v132_v48 = vmax.f32 %v110_v10, 0.0 }
  0x97   :  { %v136_v15 = vsub.f32 0.0, %v134_v13  ;;  %v137_v16 = vsub.f32 0.0, %v135_v14 }
  0x99   :  { %v138_v19 = vmul.f32 1.442695, %v136_v15  ;;  %v140_v20 = vmul.f32 1.442695, %v137_v16 }
  0x9a   :  { %v218_v22 = vpop.f32.mrf.mxu3  ;;  %v198_v23 = vpop.f32.mrf.mxu2 }
  0x9b   :  { %272 = vpow2.f32 %v138_v19  ;;  %v219_v24 = vadd.f32 %v218_v22, %v178_v17  ;;  %v199_v25 = vadd.f32 %v198_v23, %v177_v18 }
  0x9c   :  { %274 = vpow2.f32 %v140_v20 }
  0x9d   :  { %v223_v26 = vrot.slane %v219_v24, 7 }
  0x9f   :  { %v224_v28 = vsel %vm165_vm1, %v199_v25, %v223_v26 }
  0xa0   :  { %226 = vst.msk [vmem:[#allocation11] sm:$0x3] %vm493_vm2, %v224_v28 }
  0xa1   :  { %v273_v29 = vpop.eup %272  ;;  %248 = dma.vmem_to_hbm [thread:$0]  %s244_s16, 32, %s246_s4, [#allocation12]  }
  0xa2   :  { %v275_v30 = vpop.eup %274  ;;  %v142_v31 = vadd.f32 1.0, %v273_v29  ;;  %v145_v33 = vmul.f32 -0.5, %v273_v29  ;;  %v148_v37 = vand.u32 2147483647, %v273_v29 }
  0xa3   :  { %v151_v32 = vadd.f32 1.0, %v275_v30  ;;  %v154_v34 = vmul.f32 -0.5, %v275_v30  ;;  %v157_v38 = vand.u32 2147483647, %v275_v30 }
  0xa4   :  { %276 = vlog2.f32 %v142_v31  ;;  %v146_v35 = vadd.f32 1.0, %v145_v33  ;;  %vm149_vm3 = vcmp.lt.f32.partialorder %v148_v37, 0.0004427343 }
  0xa5   :  { %278 = vlog2.f32 %v151_v32  ;;  %v155_v36 = vadd.f32 1.0, %v154_v34  ;;  %vm158_vm4 = vcmp.lt.f32.partialorder %v157_v38, 0.0004427343 }
  0xa6   :  { %v147_v42 = vmul.f32 %v273_v29, %v146_v35 }
  0xa7   :  { %v156_v44 = vmul.f32 %v275_v30, %v155_v36 }
  0xaa   :  { %v277_v39 = vpop.eup %276 }
  0xab   :  { %v279_v40 = vpop.eup %278  ;;  %v144_v41 = vmul.f32 0.6931472, %v277_v39 }
  0xac   :  { %v153_v43 = vmul.f32 0.6931472, %v279_v40 }
  0xad   :  { %v150_v46 = vsel %vm149_vm3, %v147_v42, %v144_v41 }
  0xae   :  { %v159_v47 = vsel %vm158_vm4, %v156_v44, %v153_v43  ;;  %v160_v50 = vadd.f32 %v150_v46, %v132_v48 }
  0xaf   :  { %v161_v49 = vadd.f32 %v159_v47, %v133_v45 }
  0xb1   :  { %v164_v51 = vrot.slane %v161_v49, 7 }
  0xb3   :  { %v166_v52 = vsel %vm165_vm1, %v160_v50, %v164_v51 }
  0xb4   :  { %172 = vst.msk [vmem:[#allocation10] sm:$0x3] %vm493_vm2, %v166_v52 }
  0xb5   :  { %237 = dma.vmem_to_hbm [thread:$0]  %s233_s19, 32, %s235_s22, [#allocation4]  }
  0xb6   :  { %430 = dma.done.wait [#allocation4], 32  }
  0xb7   :  { %431 = vsyncadd [#allocation4], 4294967264 }
  0xb8   :  { %432 = dma.done.wait [#allocation12], 32  }
  0xb9   :  { %433 = vsyncadd [#allocation12], 4294967264 }
  0xba   :  { %257 = vsyncpa [#allocation3], 1 }
  0xbb   :  { %258 = vsyncpa [#allocation6], 1 }
  0xbc   :  { %259 = vsyncpa [#allocation9], 1 }
  0xbd   :  { %260 = vsyncpa [#allocation4], 1 }
  0xbe   :  { %261 = vsyncpa [#allocation12], 1 }

</bundles_post_ra>
